<compile_context>
chip_gen: v7x
topology: tpu7x:2x2x1
jax: 0.10.0
libtpu: 0.0.40
codegen_flags: <defaults>
</compile_context>

<pallas_src>
import functools

import jax
import jax.numpy as jnp
from jax.experimental import pallas as pl
from jax.experimental.pallas import tpu as pltpu

IGNORE_INDEX = -100  # nn.CrossEntropyLoss default


def _vmem_limit_bytes():
    """Generation-aware scoped-VMEM request."""
    cap = None
    try:
        info = pltpu.get_tpu_info()
        cap = getattr(info, "vmem_capacity_bytes", None)
    except Exception:
        cap = None
    if cap is not None and int(cap) >= 96 * 1024 * 1024:
        return 64 * 1024 * 1024          # v5e / v6e: 128 MiB physical VMEM
    return 48 * 1024 * 1024              # v7x (64 MiB physical) or unknown -> conservative


def _choose_tiles(n_rows, num_classes, dtype_bytes, vmem_limit):
    # sublane granularity for packed dtypes (f32 -> 8, bf16 -> 16, int8/fp8 -> 32)
    gran = max(8, 32 // dtype_bytes)

    if num_classes <= 8192:
        v_tile = num_classes             # single chunk; full-dim block needs no 128 padding
    else:
        # balance chunks so the tail chunk is not nearly empty
        n_chunks = -(-num_classes // 8192)
        v_tile = ((-(-num_classes // n_chunks) + 127) // 128) * 128

    # VMEM budget per element: 2x native bytes (double-buffered logits stream) plus ~8 B of
    # f32 working temporaries (upcast chunk + exp result) that Mosaic may materialize.
    per_elem_bytes = 2 * dtype_bytes + 8
    budget = int(vmem_limit * 0.70)
    rows = budget // (v_tile * per_elem_bytes)
    rows = max(gran, (rows // gran) * gran)
    rows = min(rows, 4096)                                     # keep per-tile scratch small
    rows = min(rows, ((n_rows + gran - 1) // gran) * gran)     # never larger than needed
    return rows, v_tile


def _ce_kernel(logits_ref, tgt_ref, out_ref, m_ref, l_ref, picked_ref,
               *, ignore_index, num_classes, v_tile, mask_v_tail):
    j = pl.program_id(1)
    last_j = pl.num_programs(1) - 1

    @pl.when(j == 0)
    def _():
        m_ref[...] = jnp.full_like(m_ref, -jnp.inf)
        l_ref[...] = jnp.zeros_like(l_ref)
        picked_ref[...] = jnp.zeros_like(picked_ref)

    tgt = tgt_ref[...]                                   # (TM, 1) int32
    # Shift the (cheap, per-row) target vector into chunk-local coordinates instead of
    # adding j*v_tile to every element of the lane iota.
    local_tgt = tgt - j * v_tile

    chunk = logits_ref[...].astype(jnp.float32)          # (TM, TV)
    lane = jax.lax.broadcasted_iota(jnp.int32, chunk.shape, 1)   # chunk-local class index

    def accumulate(c):
        # online (streaming) log-sum-exp over the class axis
        m_prev = m_ref[...]
        m_new = jnp.maximum(m_prev, jnp.max(c, axis=-1, keepdims=True))
        l_ref[...] = (l_ref[...] * jnp.exp(m_prev - m_new)
                      + jnp.sum(jnp.exp(c - m_new), axis=-1, keepdims=True))
        m_ref[...] = m_new
        # gather logit[row, tgt[row]] via one-hot on the local lane iota; the target class
        # lives in exactly one vocab chunk, so plain accumulation is exact.
        picked_ref[...] += jnp.sum(
            jnp.where(lane == local_tgt, c, 0.0), axis=-1, keepdims=True)

    if mask_v_tail:
        # Pay the compare+select tail mask only on the final vocab chunk.
        @pl.when(j == last_j)
        def _():
            limit = num_classes - j * v_tile
            accumulate(jnp.where(lane < limit, chunk, -jnp.inf))

        @pl.when(j != last_j)
        def _():
            accumulate(chunk)
    else:
        accumulate(chunk)

    @pl.when(j == last_j)
    def _():
        lse = m_ref[...] + jnp.log(l_ref[...])                        # (TM, 1)
        valid = tgt != ignore_index                                   # (TM, 1) bool
        per_row = jnp.where(valid, lse - picked_ref[...], 0.0)        # -log p[target]
        loss_sum = jnp.sum(per_row)
        cnt = jnp.sum(valid.astype(jnp.float32))
        # lane-dense partial output: sum in lane 0, count in lane 1, zeros elsewhere
        out_lane = jax.lax.broadcasted_iota(jnp.int32, out_ref.shape, 2)
        out_ref[...] = jnp.where(out_lane == 0, loss_sum,
                                 jnp.where(out_lane == 1, cnt, 0.0))


def attention_loss(outputs, targets, ignore_index=IGNORE_INDEX, row_tile=None):
    """Equivalent of Attention_Loss.forward: mean CE over flattened (N, V) logits."""
    V = outputs.shape[-1]
    logits = outputs.reshape(-1, V)                     # (N, V), kept in native dtype
    tgt = targets.reshape(-1).astype(jnp.int32)         # (N,)
    N = logits.shape[0]

    vmem_limit = _vmem_limit_bytes()
    auto_rows, v_tile = _choose_tiles(N, V, jnp.dtype(logits.dtype).itemsize, vmem_limit)
    row_tile = auto_rows if row_tile is None else row_tile
    grid_rows = pl.cdiv(N, row_tile)
    grid_v = pl.cdiv(V, v_tile)

    # pad only the tiny targets vector so its row dim divides exactly; padded rows are
    # marked ignore_index so they never contribute (logits are NOT copied/padded).
    n_padded = grid_rows * row_tile
    if n_padded != N:
        tgt = jnp.pad(tgt, (0, n_padded - N), constant_values=ignore_index)
    tgt2d = tgt.reshape(n_padded, 1)

    kernel = functools.partial(
        _ce_kernel, ignore_index=ignore_index, num_classes=V,
        v_tile=v_tile, mask_v_tail=(V % v_tile) != 0)

    parts = pl.pallas_call(
        kernel,
        out_shape=jax.ShapeDtypeStruct((grid_rows, 8, 128), jnp.float32),
        grid_spec=pltpu.PrefetchScalarGridSpec(
            num_scalar_prefetch=0,
            grid=(grid_rows, grid_v),
            in_specs=[
                pl.BlockSpec((row_tile, v_tile), lambda i, j: (i, j)),
                pl.BlockSpec((row_tile, 1), lambda i, j: (i, 0)),
            ],
            out_specs=pl.BlockSpec((1, 8, 128), lambda i, j: (i, 0, 0)),
            scratch_shapes=[
                pltpu.VMEM((row_tile, 1), jnp.float32),   # running max  m
                pltpu.VMEM((row_tile, 1), jnp.float32),   # running sum  l
                pltpu.VMEM((row_tile, 1), jnp.float32),   # gathered target logit
            ],
        ),
        compiler_params=pltpu.CompilerParams(
            # TODO(synk): on v7x, verify the row axis shards across both TensorCores in the
            # profile; if one TC is idle, switch the first axis to pltpu.CORE_PARALLEL.
            dimension_semantics=("parallel", "arbitrary"),
            vmem_limit_bytes=vmem_limit,
        ),
    )(logits, tgt2d)

    # lane 0 holds per-row-tile loss sums, lane 1 per-row-tile valid counts
    return jnp.sum(parts[:, 0, 0]) / jnp.sum(parts[:, 0, 1])


if __name__ == "__main__":
    def reference(outputs, targets, ignore_index=IGNORE_INDEX):
        V = outputs.shape[-1]
        logits = outputs.reshape(-1, V).astype(jnp.float32)
        flat_tgt = targets.reshape(-1)
        logp = jax.nn.log_softmax(logits, axis=-1)
        valid = flat_tgt != ignore_index
        safe = jnp.where(valid, flat_tgt, 0)
        nll = -jnp.take_along_axis(logp, safe[:, None], axis=-1)[:, 0]
        return jnp.sum(jnp.where(valid, nll, 0.0)) / jnp.sum(valid.astype(jnp.float32))

    key = jax.random.PRNGKey(0)

    # test 1: module-spec small shapes, with ignored positions
    k1, k2, key = jax.random.split(key, 3)
    outputs = jax.random.normal(k1, (2, 8, 32), dtype=jnp.float32)
    targets = jax.random.randint(k2, (2, 8), 0, 32, dtype=jnp.int32)
    targets = targets.at[0, 0].set(IGNORE_INDEX)
    targets = targets.at[1, 3].set(IGNORE_INDEX)
    loss = attention_loss(outputs, targets)
    jax.block_until_ready(loss)
    ref = reference(outputs, targets)
    assert jnp.allclose(loss, ref, rtol=1e-5, atol=1e-5), (loss, ref)

    # test 2: N not divisible by the row tile and V not a multiple of 128
    # (exercises targets-only padding + partial logits row block)
    k1, k2, key = jax.random.split(key, 3)
    outputs2 = jax.random.normal(k1, (3, 5, 200), dtype=jnp.float32)
    targets2 = jax.random.randint(k2, (3, 5), 0, 200, dtype=jnp.int32)
    targets2 = targets2.at[2, 4].set(IGNORE_INDEX)
    loss2 = attention_loss(outputs2, targets2)
    jax.block_until_ready(loss2)
    ref2 = reference(outputs2, targets2)
    assert jnp.allclose(loss2, ref2, rtol=1e-4, atol=1e-4), (loss2, ref2)

    # test 3: bf16 logits DMA'd in native dtype, upcast to f32 inside the kernel
    k1, k2, key = jax.random.split(key, 3)
    outputs3 = jax.random.normal(k1, (2, 8, 32), dtype=jnp.bfloat16)
    targets3 = jax.random.randint(k2, (2, 8), 0, 32, dtype=jnp.int32)
    loss3 = attention_loss(outputs3, targets3)
    jax.block_until_ready(loss3)
    ref3 = reference(outputs3, targets3)
    assert jnp.allclose(loss3, ref3, rtol=1e-4, atol=1e-4), (loss3, ref3)

    # test 4: forced small row tile -> grid_rows > 1 (exercises parallel row axis and the
    # lane-dense per-tile partial output writeback)
    k1, k2, key = jax.random.split(key, 3)
    outputs4 = jax.random.normal(k1, (4, 8, 256), dtype=jnp.float32)
    targets4 = jax.random.randint(k2, (4, 8), 0, 256, dtype=jnp.int32)
    targets4 = targets4.at[3, 7].set(IGNORE_INDEX)
    loss4 = attention_loss(outputs4, targets4, row_tile=8)
    jax.block_until_ready(loss4)
    ref4 = reference(outputs4, targets4)
    assert jnp.allclose(loss4, ref4, rtol=1e-4, atol=1e-4), (loss4, ref4)

    # test 5: V > 8192 -> balanced vocab chunking + tail-only -inf mask + online LSE carry
    k1, k2, key = jax.random.split(key, 3)
    outputs5 = jax.random.normal(k1, (2, 8, 8320), dtype=jnp.float32)
    targets5 = jax.random.randint(k2, (2, 8), 0, 8320, dtype=jnp.int32)
    targets5 = targets5.at[0, 2].set(IGNORE_INDEX)
    loss5 = attention_loss(outputs5, targets5)
    jax.block_until_ready(loss5)
    ref5 = reference(outputs5, targets5)
    assert jnp.allclose(loss5, ref5, rtol=1e-4, atol=1e-4), (loss5, ref5)

    print("KERNEL_OK")
</pallas_src>

<mosaic_0001>
module attributes {stable_mosaic.version = 11 : i64} {
  func.func @_ce_kernel(%arg0: i32, %arg1: i32, %arg2: memref<16x32xf32, #tpu.memory_space<vmem>>, %arg3: memref<16x1xi32, #tpu.memory_space<vmem>>, %arg4: memref<1x8x128xf32, #tpu.memory_space<vmem>>, %arg5: memref<16x1xf32, #tpu.memory_space<vmem>>, %arg6: memref<16x1xf32, #tpu.memory_space<vmem>>, %arg7: memref<16x1xf32, #tpu.memory_space<vmem>>) attributes {dimension_semantics = [#tpu.dimension_semantics<parallel>, #tpu.dimension_semantics<arbitrary>], iteration_bounds = array<i64: 1, 1>, scalar_prefetch = 0 : i64, scratch_operands = 3 : i64, tpu.core_type = #tpu.core_type<tc>, window_params = [{transform_indices = @transform_0, window_bounds = array<i64: 16, 32>}, {transform_indices = @transform_1, window_bounds = array<i64: 16, 1>}, {transform_indices = @transform_2, window_bounds = array<i64: 1, 8, 128>}]} {
    %c0_i32 = arith.constant 0 : i32
    %0 = arith.cmpi eq, %arg1, %c0_i32 : i32
    %1 = arith.extui %0 : i1 to i32
    %c0_i32_0 = arith.constant 0 : i32
    %2 = arith.cmpi ne, %1, %c0_i32_0 : i32
    scf.if %2 {
      %cst_21 = arith.constant 0xFF800000 : f32
      %37 = vector.broadcast %cst_21 : f32 to vector<16x1xf32>
      %c0_22 = arith.constant 0 : index
      %c0_23 = arith.constant 0 : index
      %38 = vector.load %arg5[%c0_22, %c0_23] : memref<16x1xf32, #tpu.memory_space<vmem>>, vector<16x1xf32>
      tpu.vector_store %arg5[%c0_22, %c0_23], %37 {strides = array<i32>} : memref<16x1xf32, #tpu.memory_space<vmem>>, vector<16x1xf32>,
      %cst_24 = arith.constant 0.000000e+00 : f32
      %39 = vector.broadcast %cst_24 : f32 to vector<16x1xf32>
      %c0_25 = arith.constant 0 : index
      %c0_26 = arith.constant 0 : index
      %40 = vector.load %arg6[%c0_25, %c0_26] : memref<16x1xf32, #tpu.memory_space<vmem>>, vector<16x1xf32>
      tpu.vector_store %arg6[%c0_25, %c0_26], %39 {strides = array<i32>} : memref<16x1xf32, #tpu.memory_space<vmem>>, vector<16x1xf32>,
      %cst_27 = arith.constant 0.000000e+00 : f32
      %41 = vector.broadcast %cst_27 : f32 to vector<16x1xf32>
      %c0_28 = arith.constant 0 : index
      %c0_29 = arith.constant 0 : index
      %42 = vector.load %arg7[%c0_28, %c0_29] : memref<16x1xf32, #tpu.memory_space<vmem>>, vector<16x1xf32>
      tpu.vector_store %arg7[%c0_28, %c0_29], %41 {strides = array<i32>} : memref<16x1xf32, #tpu.memory_space<vmem>>, vector<16x1xf32>,
    } else {
    }
    %c0 = arith.constant 0 : index
    %c0_1 = arith.constant 0 : index
    %3 = vector.load %arg3[%c0, %c0_1] : memref<16x1xi32, #tpu.memory_space<vmem>>, vector<16x1xi32>
    %c32_i32 = arith.constant 32 : i32
    %4 = arith.muli %arg1, %c32_i32 : i32
    %5 = vector.broadcast %4 : i32 to vector<16x1xi32>
    %6 = arith.subi %3, %5 : vector<16x1xi32>
    %c0_2 = arith.constant 0 : index
    %c0_3 = arith.constant 0 : index
    %7 = vector.load %arg2[%c0_2, %c0_3] : memref<16x32xf32, #tpu.memory_space<vmem>>, vector<16x32xf32>
    %8 = tpu.iota {dimensions = array<i32: 1>} : vector<16x32xi32>
    %c0_4 = arith.constant 0 : index
    %c0_5 = arith.constant 0 : index
    %9 = vector.load %arg5[%c0_4, %c0_5] : memref<16x1xf32, #tpu.memory_space<vmem>>, vector<16x1xf32>
    %cst = arith.constant dense<0xFF800000> : vector<16xf32>
    %10 = vector.multi_reduction <maximumf>, %7, %cst [1] : vector<16x32xf32> to vector<16xf32>
    %11 = vector.shape_cast %10 : vector<16xf32> to vector<16x1xf32>
    %12 = arith.maximumf %9, %11 : vector<16x1xf32>
    %c0_6 = arith.constant 0 : index
    %c0_7 = arith.constant 0 : index
    %13 = vector.load %arg6[%c0_6, %c0_7] : memref<16x1xf32, #tpu.memory_space<vmem>>, vector<16x1xf32>
    %14 = arith.subf %9, %12 : vector<16x1xf32>
    %15 = math.exp %14 : vector<16x1xf32>
    %16 = arith.mulf %13, %15 : vector<16x1xf32>
    %17 = vector.broadcast %12 : vector<16x1xf32> to vector<16x32xf32>
    %18 = arith.subf %7, %17 : vector<16x32xf32>
    %19 = math.exp %18 : vector<16x32xf32>
    %cst_8 = arith.constant dense<0.000000e+00> : vector<16xf32>
    %20 = vector.multi_reduction <add>, %19, %cst_8 [1] : vector<16x32xf32> to vector<16xf32>
    %21 = vector.shape_cast %20 : vector<16xf32> to vector<16x1xf32>
    %22 = arith.addf %16, %21 : vector<16x1xf32>
    %c0_9 = arith.constant 0 : index
    %c0_10 = arith.constant 0 : index
    %23 = vector.load %arg6[%c0_9, %c0_10] : memref<16x1xf32, #tpu.memory_space<vmem>>, vector<16x1xf32>
    tpu.vector_store %arg6[%c0_9, %c0_10], %22 {strides = array<i32>} : memref<16x1xf32, #tpu.memory_space<vmem>>, vector<16x1xf32>,
    %c0_11 = arith.constant 0 : index
    %c0_12 = arith.constant 0 : index
    %24 = vector.load %arg5[%c0_11, %c0_12] : memref<16x1xf32, #tpu.memory_space<vmem>>, vector<16x1xf32>
    tpu.vector_store %arg5[%c0_11, %c0_12], %12 {strides = array<i32>} : memref<16x1xf32, #tpu.memory_space<vmem>>, vector<16x1xf32>,
    %c0_13 = arith.constant 0 : index
    %c0_14 = arith.constant 0 : index
    %25 = vector.load %arg7[%c0_13, %c0_14] : memref<16x1xf32, #tpu.memory_space<vmem>>, vector<16x1xf32>
    %26 = vector.broadcast %6 : vector<16x1xi32> to vector<16x32xi32>
    %27 = arith.cmpi eq, %8, %26 : vector<16x32xi32>
    %cst_15 = arith.constant 0.000000e+00 : f32
    %28 = vector.broadcast %cst_15 : f32 to vector<16x32xf32>
    %29 = arith.select %27, %7, %28 : vector<16x32xi1>, vector<16x32xf32>
    %cst_16 = arith.constant dense<0.000000e+00> : vector<16xf32>
    %30 = vector.multi_reduction <add>, %29, %cst_16 [1] : vector<16x32xf32> to vector<16xf32>
    %31 = vector.shape_cast %30 : vector<16xf32> to vector<16x1xf32>
    %32 = arith.addf %25, %31 : vector<16x1xf32>
    %c0_17 = arith.constant 0 : index
    %c0_18 = arith.constant 0 : index
    %33 = vector.load %arg7[%c0_17, %c0_18] : memref<16x1xf32, #tpu.memory_space<vmem>>, vector<16x1xf32>
    tpu.vector_store %arg7[%c0_17, %c0_18], %32 {strides = array<i32>} : memref<16x1xf32, #tpu.memory_space<vmem>>, vector<16x1xf32>,
    %c0_i32_19 = arith.constant 0 : i32
    %34 = arith.cmpi eq, %arg1, %c0_i32_19 : i32
    %35 = arith.extui %34 : i1 to i32
    %c0_i32_20 = arith.constant 0 : i32
    %36 = arith.cmpi ne, %35, %c0_i32_20 : i32
    scf.if %36 {
      %c0_21 = arith.constant 0 : index
      %c0_22 = arith.constant 0 : index
      %37 = vector.load %arg5[%c0_21, %c0_22] : memref<16x1xf32, #tpu.memory_space<vmem>>, vector<16x1xf32>
      %c0_23 = arith.constant 0 : index
      %c0_24 = arith.constant 0 : index
      %38 = vector.load %arg6[%c0_23, %c0_24] : memref<16x1xf32, #tpu.memory_space<vmem>>, vector<16x1xf32>
      %39 = math.log %38 : vector<16x1xf32>
      %40 = arith.addf %37, %39 : vector<16x1xf32>
      %c-100_i32 = arith.constant -100 : i32
      %41 = vector.broadcast %c-100_i32 : i32 to vector<16x1xi32>
      %42 = arith.cmpi ne, %3, %41 : vector<16x1xi32>
      %c0_25 = arith.constant 0 : index
      %c0_26 = arith.constant 0 : index
      %43 = vector.load %arg7[%c0_25, %c0_26] : memref<16x1xf32, #tpu.memory_space<vmem>>, vector<16x1xf32>
      %44 = arith.subf %40, %43 : vector<16x1xf32>
      %cst_27 = arith.constant 0.000000e+00 : f32
      %45 = vector.broadcast %cst_27 : f32 to vector<16x1xf32>
      %46 = arith.select %42, %44, %45 : vector<16x1xi1>, vector<16x1xf32>
      %47 = vector.shape_cast %46 : vector<16x1xf32> to vector<1x16x1xf32>
      %cst_28 = arith.constant dense<0.000000e+00> : vector<1xf32>
      %48 = vector.multi_reduction <add>, %47, %cst_28 [1, 2] : vector<1x16x1xf32> to vector<1xf32>
      %49 = vector.shape_cast %48 : vector<1xf32> to vector<1x1x1xf32>
      %50 = vector.extract %49[0, 0, 0] : f32 from vector<1x1x1xf32>
      %51 = arith.extui %42 : vector<16x1xi1> to vector<16x1xi32>
      %52 = arith.sitofp %51 : vector<16x1xi32> to vector<16x1xf32>
      %53 = vector.shape_cast %52 : vector<16x1xf32> to vector<1x16x1xf32>
      %cst_29 = arith.constant dense<0.000000e+00> : vector<1xf32>
      %54 = vector.multi_reduction <add>, %53, %cst_29 [1, 2] : vector<1x16x1xf32> to vector<1xf32>
      %55 = vector.shape_cast %54 : vector<1xf32> to vector<1x1x1xf32>
      %56 = vector.extract %55[0, 0, 0] : f32 from vector<1x1x1xf32>
      %57 = tpu.iota {dimensions = array<i32: 2>} : vector<1x8x128xi32>
      %c0_i32_30 = arith.constant 0 : i32
      %58 = vector.broadcast %c0_i32_30 : i32 to vector<1x8x128xi32>
      %59 = arith.cmpi eq, %57, %58 : vector<1x8x128xi32>
      %c1_i32 = arith.constant 1 : i32
      %60 = vector.broadcast %c1_i32 : i32 to vector<1x8x128xi32>
      %61 = arith.cmpi eq, %57, %60 : vector<1x8x128xi32>
      %cst_31 = arith.constant 0.000000e+00 : f32
      %62 = vector.broadcast %56 : f32 to vector<1x8x128xf32>
      %63 = vector.broadcast %cst_31 : f32 to vector<1x8x128xf32>
      %64 = arith.select %61, %62, %63 : vector<1x8x128xi1>, vector<1x8x128xf32>
      %65 = vector.broadcast %50 : f32 to vector<1x8x128xf32>
      %66 = arith.select %59, %65, %64 : vector<1x8x128xi1>, vector<1x8x128xf32>
      %c0_32 = arith.constant 0 : index
      %c0_33 = arith.constant 0 : index
      %c0_34 = arith.constant 0 : index
      %67 = vector.load %arg4[%c0_32, %c0_33, %c0_34] : memref<1x8x128xf32, #tpu.memory_space<vmem>>, vector<1x8x128xf32>
      tpu.vector_store %arg4[%c0_32, %c0_33, %c0_34], %66 {strides = array<i32>} : memref<1x8x128xf32, #tpu.memory_space<vmem>>, vector<1x8x128xf32>,
    } else {
    }
    return
  }
  func.func @transform_0(%arg0: i32, %arg1: i32) -> (i32, i32) {
    %c0_i32 = arith.constant 0 : i32
    return %arg0, %arg1 : i32, i32
  }
  func.func @transform_1(%arg0: i32, %arg1: i32) -> (i32, i32) {
    %c0_i32 = arith.constant 0 : i32
    %c0_i32_0 = arith.constant 0 : i32
    return %arg0, %c0_i32 : i32, i32
  }
  func.func @transform_2(%arg0: i32, %arg1: i32) -> (i32, i32, i32) {
    %c0_i32 = arith.constant 0 : i32
    %c0_i32_0 = arith.constant 0 : i32
    %c0_i32_1 = arith.constant 0 : i32
    return %arg0, %c0_i32, %c0_i32_0 : i32, i32, i32
  }
}

</mosaic_0001>

<bundles_post_ra>
// kernel: tpu_custom_call.1
= control target key start
LH: loop header
LB: loop body
LE: loop exit
PB: predicated region body
PF: predicated region fallthrough
CT: control target
= control target key end

     0   :  { %vm35_vm0 = vcmask 261120   ;;  %s308_s0 = inlined_call_operand.vmem [shape: f32[16,32], index: 0, kind: input, shape index: {}]   ;;  %s309_s1 = inlined_call_operand.vmem [shape: s32[16,1], index: 1, kind: input, shape index: {}]   ;;  %s310_s2 = inlined_call_operand.hbm [shape: f32[1,8,128], index: 2, kind: output, shape index: {}]  }
   0x1   :  { %v29_v0 = vld [vmem:[%s308_s0] sm:$0xff]  ;;  %v30_v1 = vld [vmem:[%s308_s0 + $0x8] sm:$0xff] }
   0x2   :  { %7 = vsyncpa [#allocation6], 0  ;;  %v36_v2 = vsel %vm35_vm0, %v29_v0, -inf  ;;  %v39_v3 = vsel %vm35_vm0, %v30_v1, -inf  ;;  %vm16_vm1 = vcmask 7168   ;;  %v223_v4 = vmov -inf  }
   0x3   :  { %37 = vmax.xlane.f32.xlu0 %v36_v2  ;;  %17 = vst.msk [vmem:[#allocation2] sm:$0xff] %vm16_vm1, %v223_v4  ;;  %18 = vst.msk [vmem:[#allocation2 + $0x8] sm:$0xff] %vm16_vm1, %v223_v4  ;;  %v224_v5 = vmov 0   ;;  %v225_v6 = vmov 0.0   ;;  %v263_v7 = vld [vmem:[%s309_s1] sm:$0xff]  ;;  %v271_v16 = vld [vmem:[%s309_s1 + $0x8] sm:$0xff]  ;;  %v31_v17 = vlaneseq }
   0x4   :  { %185 = vset.pattern.permute.xlu1 %v224_v5  ;;  %186 = vset.pattern.permute.xlu0 %v224_v5  ;;  %19 = vst.msk [vmem:[#allocation3] sm:$0xff] %vm16_vm1, %v225_v6  ;;  %20 = vst.msk [vmem:[#allocation3 + $0x8] sm:$0xff] %vm16_vm1, %v225_v6  ;;  %vm118_vm4 = vcmp.ne.s32.totalorder %v263_v7, 4294967196  ;;  %vm119_vm5 = vcmp.ne.s32.totalorder %v271_v16, 4294967196  ;;  %s226_s16 = smov [#allocation5]  }
   0x5   :  { %21 = vst.msk [vmem:[#allocation4] sm:$0xff] %vm16_vm1, %v225_v6  ;;  %22 = vst.msk [vmem:[#allocation4 + $0x8] sm:$0xff] %vm16_vm1, %v225_v6  ;;  %v274_v18 = vand.u32 127, %v31_v17  ;;  %v175_v4 = vsel %vm118_vm4, 1.0, %v225_v6  ;;  %v176_v5 = vsel %vm119_vm5, 1.0, %v225_v6  ;;  %s167_s17 = sshll.u32 %s226_s16, 4  ;;  %s168_s17 = int_to_ptr.vmem [resolvable:$true] %s167_s17 }
   0x6   :  { %s199_s19 = scalar_lea.vmem %s168_s17, 128  ;;  %p204_p1 = scmp.lt.s32.totalorder %s168_s17, %s168_s17 }
   0x7   :  { %40 = vmax.xlane.f32.xlu0 %v39_v3  ;;  %vm155_vm6 = vcmp.eq.s32.totalorder %v274_v18, 1  ;;  %vm154_vm7 = vcmp.eq.s32.totalorder %v274_v18, 0  ;;  %p200_p0 = scmp.ne.s32.totalorder %s168_s17, %s199_s19  ;;  %p205_p2 = scmp.lt.s32.totalorder %s199_s19, %s199_s19 }
   0x9   :  { %p206_p3 = por %p205_p2, %p204_p1 }
   0xa   :  { %v33_v8 = vld [vmem:[#allocation2] sm:$0xff]  ;;  %v34_v11 = vld [vmem:[#allocation2 + $0x8] sm:$0xff] }
   0xb   :  { %v44_v41 = vld [vmem:[#allocation3] sm:$0xff]  ;;  %v45_v45 = vld [vmem:[#allocation3 + $0x8] sm:$0xff]  ;;  %p207_p4 = pnand %p206_p3, %p200_p0 }
   0xc   :  { %v83_v35 = vld [vmem:[#allocation4] sm:$0xff]  ;;  %v84_v50 = vld [vmem:[#allocation4 + $0x8] sm:$0xff] }
  0x1d   :  { %86 = vperm.xlu0 %186, %v263_v7   ;;  %v143_v7 = vsel %vm16_vm1, %v176_v5, 0.0 }
  0x90   :  { %v38_v9 = vpop.xlane.xlu0 %37 }
  0x91   :  { %v42_v10 = vmax.f32 %v33_v8, %v38_v9 }
  0x93   :  { %v46_v12 = vsub.f32 %v33_v8, %v42_v10  ;;  %81 = vst.msk [vmem:[#allocation2] sm:$0xff] %vm16_vm1, %v42_v10  ;;  %56 = vperm.xlu1 %185, %v42_v10  }
  0x94   :  { %v41_v13 = vpop.xlane.xlu0 %40 }
  0x95   :  { %v43_v14 = vmax.f32 %v34_v11, %v41_v13  ;;  %v48_v38 = vmul.f32 1.442695, %v46_v12 }
  0x97   :  { %v47_v15 = vsub.f32 %v34_v11, %v43_v14  ;;  %82 = vst.msk [vmem:[#allocation2 + $0x8] sm:$0xff] %vm16_vm1, %v43_v14  ;;  %61 = vperm.xlu1 %185, %v43_v14   ;;  %v142_v11 = vsel %vm16_vm1, %v175_v4, 0.0 }
  0x98   :  { %v144_v13 = vadd.f32 %v143_v7, %v142_v11 }
  0x99   :  { %v50_v39 = vmul.f32 1.442695, %v47_v15 }
  0x9a   :  { %v108_v57 = vld [vmem:[#allocation2] sm:$0xff] }
  0x9b   :  { %89 = vperm.xlu1 %185, %v271_v16  }
  0x9c   :  { %v87_v19 = vpop.permute.xlu0 %86 }
  0x9d   :  { %vm91_vm2 = vcmp.eq.s32.totalorder %v274_v18, %v87_v19 }
  0x9e   :  { %v93_v20 = vsel %vm91_vm2, %v29_v0, 0.0  ;;  %v109_v63 = vld [vmem:[#allocation2 + $0x8] sm:$0xff] }
  0x9f   :  { %v95_v21 = vsel %vm35_vm0, %v93_v20, 0.0 }
  0xa0   :  { %96 = vadd.xlane.f32.xlu0 %v95_v21 }
 0x112   :  { %v57_v22 = vpop.permute.xlu1 %56 }
 0x113   :  { %v64_v23 = vsub.f32 %v29_v0, %v57_v22 }
 0x115   :  { %v66_v24 = vmul.f32 1.442695, %v64_v23 }
 0x116   :  { %v62_v25 = vpop.permute.xlu1 %61 }
 0x117   :  { %187 = vpow2.f32 %v66_v24  ;;  %v65_v26 = vsub.f32 %v30_v1, %v62_v25 }
 0x119   :  { %v68_v27 = vmul.f32 1.442695, %v65_v26 }
 0x11a   :  { %v90_v29 = vpop.permute.xlu1 %89 }
 0x11b   :  { %189 = vpow2.f32 %v68_v27  ;;  %vm92_vm3 = vcmp.eq.s32.totalorder %v274_v18, %v90_v29 }
 0x11c   :  { %v94_v33 = vsel %vm92_vm3, %v30_v1, 0.0  ;;  %191 = vpow2.f32 %v48_v38 }
 0x11d   :  { %v98_v34 = vsel %vm35_vm0, %v94_v33, 0.0  ;;  %193 = vpow2.f32 %v50_v39 }
 0x121   :  { %v188_v28 = vpop.eup %187 }
 0x122   :  { %v70_v30 = vsel %vm35_vm0, %v188_v28, 0.0 }
 0x123   :  { %71 = vadd.xlane.f32.xlu1 %v70_v30 }
 0x125   :  { %v190_v31 = vpop.eup %189 }
 0x126   :  { %v73_v32 = vsel %vm35_vm0, %v190_v31, 0.0  ;;  %v192_v40 = vpop.eup %191 }
 0x127   :  { %74 = vadd.xlane.f32.xlu1 %v73_v32  ;;  %v52_v42 = vmul.f32 %v192_v40, %v44_v41  ;;  %v194_v43 = vpop.eup %193 }
 0x128   :  { %v53_v47 = vmul.f32 %v194_v43, %v45_v45 }
 0x12b   :  { %99 = vadd.xlane.f32.xlu1 %v98_v34 }
 0x12d   :  { %v97_v36 = vpop.xlane.xlu0 %96 }
 0x12e   :  { %v101_v37 = vadd.f32 %v97_v36, %v83_v35 }
 0x130   :  { %103 = vst.msk [vmem:[#allocation4] sm:$0xff] %vm16_vm1, %v101_v37 }
 0x137   :  { %v120_v58 = vld [vmem:[#allocation4] sm:$0xff] }
 0x1b0   :  { %v72_v44 = vpop.xlane.xlu1 %71 }
 0x1b1   :  { %v76_v46 = vadd.f32 %v72_v44, %v52_v42 }
 0x1b3   :  { %79 = vst.msk [vmem:[#allocation3] sm:$0xff] %vm16_vm1, %v76_v46 }
 0x1b4   :  { %v75_v48 = vpop.xlane.xlu1 %74 }
 0x1b5   :  { %v77_v49 = vadd.f32 %v75_v48, %v53_v47 }
 0x1b7   :  { %80 = vst.msk [vmem:[#allocation3 + $0x8] sm:$0xff] %vm16_vm1, %v77_v49 }
 0x1b8   :  { %v100_v51 = vpop.xlane.xlu1 %99 }
 0x1b9   :  { %v102_v52 = vadd.f32 %v100_v51, %v84_v50 }
 0x1ba   :  { %v110_v53 = vld [vmem:[#allocation3] sm:$0xff] }
 0x1bb   :  { %104 = vst.msk [vmem:[#allocation4 + $0x8] sm:$0xff] %vm16_vm1, %v102_v52  ;;  %195 = vlog2.f32 %v110_v53 }
 0x1be   :  { %v111_v54 = vld [vmem:[#allocation3 + $0x8] sm:$0xff] }
 0x1bf   :  { %197 = vlog2.f32 %v111_v54 }
 0x1c2   :  { %v121_v1 = vld [vmem:[#allocation4 + $0x8] sm:$0xff] }
 0x1c5   :  { %v196_v55 = vpop.eup %195 }
 0x1c6   :  { %v113_v56 = vmul.f32 0.6931472, %v196_v55 }
 0x1c8   :  { %v116_v59 = vadd.f32 %v113_v56, %v108_v57 }
 0x1c9   :  { %v198_v60 = vpop.eup %197 }
 0x1ca   :  { %v115_v61 = vmul.f32 0.6931472, %v198_v60  ;;  %v122_v62 = vsub.f32 %v116_v59, %v120_v58 }
 0x1cc   :  { %v117_v0 = vadd.f32 %v115_v61, %v109_v63  ;;  %v124_v3 = vsel %vm118_vm4, %v122_v62, 0.0 }
 0x1cd   :  { %v126_v9 = vsel %vm16_vm1, %v124_v3, 0.0 }
 0x1ce   :  { %v123_v2 = vsub.f32 %v117_v0, %v121_v1 }
 0x1d0   :  { %v125_v8 = vsel %vm119_vm5, %v123_v2, 0.0 }
 0x1d1   :  { %v127_v10 = vsel %vm16_vm1, %v125_v8, 0.0 }
 0x1d2   :  { %v128_v12 = vadd.f32 %v127_v10, %v126_v9 }
 0x1d4   :  { %129 = vadd.xlane.f32.xlu1 %v128_v12 }
 0x1d8   :  { %145 = vadd.xlane.f32.xlu1 %v144_v13 }
 0x261   :  { %v130_v14 = vpop.xlane.xlu1 %129 }
 0x262   :  { %v131_v15 = vrot.slane %v130_v14, 4 }
 0x264   :  { %v132_v16 = vadd.f32 %v131_v15, %v130_v14 }
 0x265   :  { %v146_v17 = vpop.xlane.xlu1 %145 }
 0x266   :  { %v133_v19 = vrot.slane %v132_v16, 2  ;;  %v147_v20 = vrot.slane %v146_v17, 4 }
 0x268   :  { %v148_v6 = vadd.f32 %v147_v20, %v146_v17  ;;  %v134_v21 = vadd.f32 %v133_v19, %v132_v16 }
 0x26a   :  { %v149_v22 = vrot.slane %v148_v6, 2  ;;  %v135_v23 = vrot.slane %v134_v21, 1 }
 0x26c   :  { %v150_v24 = vadd.f32 %v149_v22, %v148_v6  ;;  %v136_v25 = vadd.f32 %v135_v23, %v134_v21 }
 0x26e   :  { %177 = vpush %v136_v25  ;;  %v151_v26 = vrot.slane %v150_v24, 1 }
 0x270   :  { %v152_v27 = vadd.f32 %v151_v26, %v150_v24 }
 0x272   :  { %179 = vpush %v152_v27 }
 0x29f   :  { %s178_s1 = spop %177 }
 0x2a0   :  { %v158_v29 = vstv %s178_s1 }
 0x2a3   :  { %s180_s18 = spop %179 }
 0x2a4   :  { %v156_v28 = vstv %s180_s18 }
 0x2a5   :  { %v157_v30 = vsel %vm155_vm6, %v156_v28, 0.0 }
 0x2a6   :  { %v159_v31 = vsel %vm154_vm7, %v158_v29, %v157_v30 }
 0x2a7   :  { %160 = vst [vmem:[#allocation5] sm:$0xff] %v159_v31 }
 0x2a8   :  { %210 = shalt.err (!%p207_p4)
}
 0x2a9   :  { %s211_s22 = scalar_lea.hbm %s310_s2, 128 }
 0x2aa   :  { %p212_p5 = scmp.ne.s32.totalorder %s310_s2, %s211_s22  ;;  %p215_p6 = scmp.lt.u32.totalorder %s211_s22, %s310_s2 }
 0x2ac   :  { %p217_p7 = pnand %p215_p6, %p212_p5 }
 0x2ae   :  { %220 = shalt.err (!%p217_p7)
}
 0x2af   :  { %170 = dma.vmem_to_hbm [thread:$0]  %s168_s17, 128, %s310_s2, [#allocation6]  }
 0x2b0   :  { %221 = dma.done.wait [#allocation6], 128  }
 0x2b1   :  { %222 = vsyncadd [#allocation6], 4294967168 }
 0x2b2   :  { %174 = vsyncpa [#allocation6], 1 }

</bundles_post_ra>
